<compile_context>
chip_gen: v5e
topology: v5e:2x2
jax: 0.10.0
libtpu: 0.0.40
codegen_flags: <defaults>
</compile_context>

<pallas_src>
import jax
import jax.numpy as jnp
from jax.experimental import pallas as pl
from jax.experimental.pallas import tpu as pltpu


def _round_up(n, m):
    return ((n + m - 1) // m) * m


def mlp_kernel(x_ref, w1_ref, b1_ref, w2_ref, b2_ref, w3_ref, b3_ref, o_ref):
    x = x_ref[...]                                                  # (TB, 56) f32

    h1 = jnp.dot(x, w1_ref[...], preferred_element_type=jnp.float32) + b1_ref[...]
    h1 = jnp.maximum(h1, 0.0)                                       # (TB, n1)

    h2 = jnp.dot(h1, w2_ref[...], preferred_element_type=jnp.float32) + b2_ref[...]
    h2 = jnp.maximum(h2, 0.0)                                       # (TB, n2)

    # Final layer computed transposed on the MXU so the per-tile result is a
    # lane-dense (1, TB) row rather than a sublane-oriented (TB, 1) column:
    #   y[0, b] = sum_k w3_row[0, k] * h2[b, k] + b3
    y = jax.lax.dot_general(
        w3_ref[...], h2,
        dimension_numbers=(((1,), (1,)), ((), ())),
        preferred_element_type=jnp.float32,
    ) + b3_ref[...]                                                 # (1, TB)

    o_ref[...] = y.astype(o_ref.dtype)


def mlp_forward(x, w1, b1, w2, b2, w3, b3, *, block_b=512):
    """x: (B, 56) f32; w*: (in, out); b*: (1, out).  Returns (B, 1) f32."""
    B, F = x.shape
    n1 = w1.shape[1]
    n2 = w2.shape[1]

    w3_row = jnp.transpose(w3)            # (n2, 1) -> (1, n2)
    b3_2d = jnp.reshape(b3, (1, 1))

    # Batch tile: large for real batches (amortizes ~0.35us/step overhead),
    # shrunk to a multiple of 8 for tiny batches.
    tb = min(block_b, max(8, _round_up(B, 8)))
    b_pad = _round_up(B, tb)
    if b_pad != B:
        # Zero rows are harmless for a feed-forward net; sliced off below.
        x = jnp.pad(x, ((0, b_pad - B), (0, 0)))
    num_tiles = b_pad // tb

    out_rows = pl.pallas_call(
        mlp_kernel,
        out_shape=jax.ShapeDtypeStruct((num_tiles, tb), jnp.float32),
        grid=(num_tiles,),
        in_specs=[
            pl.BlockSpec((tb, F), lambda i: (i, 0)),      # streamed x tiles
            pl.BlockSpec((F, n1), lambda i: (0, 0)),      # weights resident
            pl.BlockSpec((1, n1), lambda i: (0, 0)),
            pl.BlockSpec((n1, n2), lambda i: (0, 0)),
            pl.BlockSpec((1, n2), lambda i: (0, 0)),
            pl.BlockSpec((1, n2), lambda i: (0, 0)),
            pl.BlockSpec((1, 1), lambda i: (0, 0)),
        ],
        out_specs=pl.BlockSpec((1, tb), lambda i: (i, 0)),  # lane-dense rows
        compiler_params=pltpu.CompilerParams(
            dimension_semantics=("parallel",)),             # megacore on v7x
    )(x, w1, b1, w2, b2, w3_row, b3_2d)

    return out_rows.reshape(b_pad, 1)[:B]


def init_linear(key, fan_in, fan_out):
    # Mirrors PyTorch nn.Linear default init: U(-1/sqrt(fan_in), 1/sqrt(fan_in)).
    kw, kb = jax.random.split(key)
    bound = 1.0 / jnp.sqrt(fan_in)
    w = jax.random.uniform(kw, (fan_in, fan_out), jnp.float32, -bound, bound)
    b = jax.random.uniform(kb, (1, fan_out), jnp.float32, -bound, bound)
    return w, b


def reference_forward(x, w1, b1, w2, b2, w3, b3):
    h1 = jnp.maximum(x @ w1 + b1, 0.0)
    h2 = jnp.maximum(h1 @ w2 + b2, 0.0)
    return h2 @ w3 + b3


if __name__ == "__main__":
    n1, n2 = 32, 16   # MLP(n1, n2)
    in_features = 56

    key = jax.random.PRNGKey(0)
    kx, k1, k2, k3 = jax.random.split(key, 4)

    w1, b1 = init_linear(k1, in_features, n1)
    w2, b2 = init_linear(k2, n1, n2)
    w3, b3 = init_linear(k3, n2, 1)

    # Small batch: single tile, no padding.
    x_small = jax.random.normal(kx, (8, in_features), jnp.float32)
    out_small = jax.block_until_ready(mlp_forward(x_small, w1, b1, w2, b2, w3, b3))
    ref_small = reference_forward(x_small, w1, b1, w2, b2, w3, b3)
    assert out_small.shape == (8, 1)
    assert jnp.allclose(out_small, ref_small, atol=1e-4, rtol=1e-4)

    # Larger batch: exercises the tiled grid (2 x 512 tiles) and tail padding.
    x_big = jax.random.normal(kx, (777, in_features), jnp.float32)
    out_big = jax.block_until_ready(mlp_forward(x_big, w1, b1, w2, b2, w3, b3))
    ref_big = reference_forward(x_big, w1, b1, w2, b2, w3, b3)
    assert out_big.shape == (777, 1)
    assert jnp.allclose(out_big, ref_big, atol=1e-4, rtol=1e-4)

    print("KERNEL_OK")
</pallas_src>

<mosaic_0001>
module attributes {stable_mosaic.version = 11 : i64} {
  func.func @mlp_kernel(%arg0: i32, %arg1: memref<8x56xf32, #tpu.memory_space<vmem>>, %arg2: memref<56x32xf32, #tpu.memory_space<vmem>>, %arg3: memref<1x32xf32, #tpu.memory_space<vmem>>, %arg4: memref<32x16xf32, #tpu.memory_space<vmem>>, %arg5: memref<1x16xf32, #tpu.memory_space<vmem>>, %arg6: memref<1x16xf32, #tpu.memory_space<vmem>>, %arg7: memref<1x1xf32, #tpu.memory_space<vmem>>, %arg8: memref<1x8xf32, #tpu.memory_space<vmem>>) attributes {dimension_semantics = [#tpu.dimension_semantics<parallel>], iteration_bounds = array<i64: 1>, scalar_prefetch = 0 : i64, scratch_operands = 0 : i64, tpu.core_type = #tpu.core_type<tc>, window_params = [{transform_indices = @transform_0, window_bounds = array<i64: 8, 56>}, {pipeline_mode = #tpu.pipeline_mode<synchronous>, transform_indices = @transform_1, window_bounds = array<i64: 56, 32>}, {pipeline_mode = #tpu.pipeline_mode<synchronous>, transform_indices = @transform_2, window_bounds = array<i64: 1, 32>}, {pipeline_mode = #tpu.pipeline_mode<synchronous>, transform_indices = @transform_3, window_bounds = array<i64: 32, 16>}, {pipeline_mode = #tpu.pipeline_mode<synchronous>, transform_indices = @transform_4, window_bounds = array<i64: 1, 16>}, {pipeline_mode = #tpu.pipeline_mode<synchronous>, transform_indices = @transform_5, window_bounds = array<i64: 1, 16>}, {pipeline_mode = #tpu.pipeline_mode<synchronous>, transform_indices = @transform_6, window_bounds = array<i64: 1, 1>}, {transform_indices = @transform_7, window_bounds = array<i64: 1, 8>}]} {
    %c0 = arith.constant 0 : index
    %c0_0 = arith.constant 0 : index
    %0 = vector.load %arg1[%c0, %c0_0] : memref<8x56xf32, #tpu.memory_space<vmem>>, vector<8x56xf32>
    %c0_1 = arith.constant 0 : index
    %c0_2 = arith.constant 0 : index
    %1 = vector.load %arg2[%c0_1, %c0_2] : memref<56x32xf32, #tpu.memory_space<vmem>>, vector<56x32xf32>
    %cst = arith.constant dense<0.000000e+00> : vector<8x32xf32>
    %2 = tpu.matmul %0, %1, %cst {dimension_numbers = #tpu.dot_dimension_numbers<[1], [0], [0], [1], [0, 0, 1, 1], [], []>} : vector<8x56xf32>, vector<56x32xf32>, vector<8x32xf32> -> vector<8x32xf32>
    %c0_3 = arith.constant 0 : index
    %c0_4 = arith.constant 0 : index
    %3 = vector.load %arg3[%c0_3, %c0_4] : memref<1x32xf32, #tpu.memory_space<vmem>>, vector<1x32xf32>
    %4 = vector.broadcast %3 : vector<1x32xf32> to vector<8x32xf32>
    %5 = arith.addf %2, %4 : vector<8x32xf32>
    %cst_5 = arith.constant 0.000000e+00 : f32
    %6 = vector.broadcast %cst_5 : f32 to vector<8x32xf32>
    %7 = arith.maximumf %5, %6 : vector<8x32xf32>
    %c0_6 = arith.constant 0 : index
    %c0_7 = arith.constant 0 : index
    %8 = vector.load %arg4[%c0_6, %c0_7] : memref<32x16xf32, #tpu.memory_space<vmem>>, vector<32x16xf32>
    %cst_8 = arith.constant dense<0.000000e+00> : vector<8x16xf32>
    %9 = tpu.matmul %7, %8, %cst_8 {dimension_numbers = #tpu.dot_dimension_numbers<[1], [0], [0], [1], [0, 0, 1, 1], [], []>} : vector<8x32xf32>, vector<32x16xf32>, vector<8x16xf32> -> vector<8x16xf32>
    %c0_9 = arith.constant 0 : index
    %c0_10 = arith.constant 0 : index
    %10 = vector.load %arg5[%c0_9, %c0_10] : memref<1x16xf32, #tpu.memory_space<vmem>>, vector<1x16xf32>
    %11 = vector.broadcast %10 : vector<1x16xf32> to vector<8x16xf32>
    %12 = arith.addf %9, %11 : vector<8x16xf32>
    %cst_11 = arith.constant 0.000000e+00 : f32
    %13 = vector.broadcast %cst_11 : f32 to vector<8x16xf32>
    %14 = arith.maximumf %12, %13 : vector<8x16xf32>
    %c0_12 = arith.constant 0 : index
    %c0_13 = arith.constant 0 : index
    %15 = vector.load %arg6[%c0_12, %c0_13] : memref<1x16xf32, #tpu.memory_space<vmem>>, vector<1x16xf32>
    %cst_14 = arith.constant dense<0.000000e+00> : vector<1x8xf32>
    %16 = tpu.matmul %15, %14, %cst_14 {dimension_numbers = #tpu.dot_dimension_numbers<[1], [1], [0], [0], [0, 0, 1, 0], [], []>} : vector<1x16xf32>, vector<8x16xf32>, vector<1x8xf32> -> vector<1x8xf32>
    %c0_15 = arith.constant 0 : index
    %c0_16 = arith.constant 0 : index
    %17 = vector.load %arg7[%c0_15, %c0_16] : memref<1x1xf32, #tpu.memory_space<vmem>>, vector<1x1xf32>
    %18 = vector.broadcast %17 : vector<1x1xf32> to vector<1x8xf32>
    %19 = arith.addf %16, %18 : vector<1x8xf32>
    %c0_17 = arith.constant 0 : index
    %c0_18 = arith.constant 0 : index
    %20 = vector.load %arg8[%c0_17, %c0_18] : memref<1x8xf32, #tpu.memory_space<vmem>>, vector<1x8xf32>
    tpu.vector_store %arg8[%c0_17, %c0_18], %19 {strides = array<i32>} : memref<1x8xf32, #tpu.memory_space<vmem>>, vector<1x8xf32>,
    return
  }
  func.func @transform_0(%arg0: i32) -> (i32, i32) {
    %c0_i32 = arith.constant 0 : i32
    %c0_i32_0 = arith.constant 0 : i32
    return %arg0, %c0_i32 : i32, i32
  }
  func.func @transform_1(%arg0: i32) -> (i32, i32) {
    %c0_i32 = arith.constant 0 : i32
    %c0_i32_0 = arith.constant 0 : i32
    %c0_i32_1 = arith.constant 0 : i32
    return %c0_i32, %c0_i32_0 : i32, i32
  }
  func.func @transform_2(%arg0: i32) -> (i32, i32) {
    %c0_i32 = arith.constant 0 : i32
    %c0_i32_0 = arith.constant 0 : i32
    %c0_i32_1 = arith.constant 0 : i32
    return %c0_i32, %c0_i32_0 : i32, i32
  }
  func.func @transform_3(%arg0: i32) -> (i32, i32) {
    %c0_i32 = arith.constant 0 : i32
    %c0_i32_0 = arith.constant 0 : i32
    %c0_i32_1 = arith.constant 0 : i32
    return %c0_i32, %c0_i32_0 : i32, i32
  }
  func.func @transform_4(%arg0: i32) -> (i32, i32) {
    %c0_i32 = arith.constant 0 : i32
    %c0_i32_0 = arith.constant 0 : i32
    %c0_i32_1 = arith.constant 0 : i32
    return %c0_i32, %c0_i32_0 : i32, i32
  }
  func.func @transform_5(%arg0: i32) -> (i32, i32) {
    %c0_i32 = arith.constant 0 : i32
    %c0_i32_0 = arith.constant 0 : i32
    %c0_i32_1 = arith.constant 0 : i32
    return %c0_i32, %c0_i32_0 : i32, i32
  }
  func.func @transform_6(%arg0: i32) -> (i32, i32) {
    %c0_i32 = arith.constant 0 : i32
    %c0_i32_0 = arith.constant 0 : i32
    %c0_i32_1 = arith.constant 0 : i32
    return %c0_i32, %c0_i32_0 : i32, i32
  }
  func.func @transform_7(%arg0: i32) -> (i32, i32) {
    %c0_i32 = arith.constant 0 : i32
    %c0_i32_0 = arith.constant 0 : i32
    return %arg0, %c0_i32 : i32, i32
  }
}

</mosaic_0001>

<bundles_post_ra>
// kernel: tpu_custom_call.1
= control target key start
LH: loop header
LB: loop body
LE: loop exit
PB: predicated region body
PF: predicated region fallthrough
CT: control target
= control target key end

     0   :  { %s280_s0 = inlined_call_operand.vmem [shape: f32[8,56], index: 0, kind: input, shape index: {}]   ;;  %s281_s1 = inlined_call_operand.vmem [shape: f32[56,32], index: 1, kind: input, shape index: {}]   ;;  %s282_s2 = inlined_call_operand.vmem [shape: f32[1,32], index: 2, kind: input, shape index: {}]   ;;  %s283_s3 = inlined_call_operand.vmem [shape: f32[32,16], index: 3, kind: input, shape index: {}]   ;;  %s284_s4 = inlined_call_operand.vmem [shape: f32[1,16], index: 4, kind: input, shape index: {}]   ;;  %s285_s5 = inlined_call_operand.vmem [shape: f32[1,16], index: 5, kind: input, shape index: {}]   ;;  %s286_s6 = inlined_call_operand.<no memory space> [shape: f32[1,1], index: 6, kind: input, shape index: {}]   ;;  %s287_s7 = inlined_call_operand.hbm [shape: f32[1,8], index: 7, kind: output, shape index: {}]  }
   0x1   :  { %v12_v0 = vstv %s286_s6 }
   0x2   :  { %13 = vst [vmem:[#allocation2] sm:$0x1] %v12_v0 }
   0x3   :  { %v36_v1 = vld [vmem:[%s281_s1 + $0x30] sm:$0xff]  ;;  %v35_v2 = vld [vmem:[%s281_s1 + $0x28] sm:$0xff]  ;;  %v34_v3 = vld [vmem:[%s281_s1 + $0x20] sm:$0xff] }
   0x4   :  { %54 = vmatpush.msra.mxu0 %v36_v1  ;;  %v69_v4 = vld [vmem:[%s283_s3 + $0x18] sm:$0xff] }
   0x5   :  { %90 = vmatpush.msra.mxu1 %v69_v4  ;;  %v33_v5 = vld [vmem:[%s281_s1 + $0x18] sm:$0xff] }
   0x6   :  { %55 = vmatpush.msra.mxu0 %v35_v2 }
   0x7   :  { %14 = vsyncpa [#allocation4], 0  ;;  %v32_v6 = vld [vmem:[%s281_s1 + $0x10] sm:$0xff]  ;;  %v31_v7 = vld [vmem:[%s281_s1 + $0x8] sm:$0xff]  ;;  %vm41_vm0 = vcmask 457728   ;;  %vm74_vm1 = vcmask 261120  }
   0x8   :  { %56 = vmatpush.msra.mxu0 %v34_v3  ;;  %v30_v8 = vld [vmem:[%s281_s1] sm:$0xff]  ;;  %v68_v10 = vld [vmem:[%s283_s3 + $0x10] sm:$0xff]  ;;  %v67_v11 = vld [vmem:[%s283_s3 + $0x8] sm:$0xff]  ;;  %v187_v18 = vmov 0   ;;  %vm107_vm2 = vcmask 130048   ;;  %s188_s28 = smov [#allocation3]  }
   0x9   :  { %v29_v9 = vld [vmem:[%s280_s0] sm:$0xff]  ;;  %91 = vmatpush.msra.mxu1 %v68_v10  ;;  %158 = vset.pattern.permute.xlu0 %v187_v18  ;;  %s141_s29 = sshll.u32 %s188_s28, 4  ;;  %s143_s9 = sshll.u32 %s287_s7, 4  ;;  %vm134_vm3 = vcmask 57344   ;;  %s142_s29 = int_to_ptr.vmem [resolvable:$true] %s141_s29  ;;  %s144_s9 = int_to_ptr.hbm [resolvable:$true] %s143_s9 }
   0xa   :  { %57 = vmatpush.msra.mxu0 %v33_v5  ;;  %v66_v12 = vld [vmem:[%s283_s3] sm:$0xff] }
   0xb   :  { %92 = vmatpush.msra.mxu1 %v67_v11  ;;  %v159_v13 = vld [vmem:[%s282_s2] ss:$0 sm:$0xff] }
   0xc   :  { %58 = vmatpush.msra.mxu0 %v32_v6  ;;  %v100_v17 = vld [vmem:[#allocation2] sm:$0x1] }
   0xd   :  { %93 = vmatpush.msra.mxu1 %v66_v12  ;;  %103 = vperm.xlu0 %158, %v100_v17   ;;  %v160_v19 = vld [vmem:[%s284_s4] ss:$0 sm:$0xff] }
   0xe   :  { %59 = vmatpush.msra.mxu0 %v31_v7  ;;  %v99_v23 = vld [vmem:[%s285_s5] sm:$0x1] }
  0x10   :  { %60 = vmatpush.msra.mxu0 %v30_v8 }
  0x11   :  { %152 = vmatmul.msk.f32.vlgmr.msra.gmra.mxu0 %vm41_vm0, %v29_v9 }
  0x7f   :  { %v104_v24 = vpop.permute.xlu0 %103 }
  0x80   :  { %v106_v25 = vperm.slane %v104_v24, 0 }
  0x8e   :  { %v62_v14 = vpop.f32.mrf.mxu0 }
  0x8f   :  { %v63_v15 = vadd.f32 %v159_v13, %v62_v14 }
  0x91   :  { %v65_v16 = vmax.f32 %v63_v15, 0.0 }
  0x93   :  { %153 = vmatmul.msk.f32.vlgmr.msra.gmra.mxu1 %vm74_vm1, %v65_v16 }
 0x110   :  { %v95_v20 = vpop.f32.mrf.mxu1 }
 0x111   :  { %v96_v21 = vadd.f32 %v160_v19, %v95_v20 }
 0x113   :  { %v98_v22 = vmax.f32 %v96_v21, 0.0 }
 0x115   :  { %154 = vmatpush.xpose.msk.msra.mxu2 %vm107_vm2, %v98_v22 }
 0x118   :  { %155 = vmatmul.msk.f32.vlgmr.msra.gmra.mxu2 %vm107_vm2, %v99_v23 }
 0x19b   :  { %v131_v26 = vpop.f32.mrf.mxu2 }
 0x19c   :  { %v132_v27 = vadd.f32 %v131_v26, %v106_v25 }
 0x19e   :  { %135 = vst.msk [vmem:[#allocation3] sm:$0x1] %vm134_vm3, %v132_v27 }
 0x19f   :  { %146 = dma.vmem_to_hbm [thread:$0]  %s142_s29, 16, %s144_s9, [#allocation4]  }
 0x1a0   :  { %185 = dma.done.wait [#allocation4], 16  }
 0x1a1   :  { %186 = vsyncadd [#allocation4], 4294967280 }
 0x1a2   :  { %151 = vsyncpa [#allocation4], 1 }

</bundles_post_ra>
